<compile_context>
chip_gen: v6e
topology: v6e:2x2x1
jax: 0.10.0
libtpu: 0.0.40
codegen_flags: <defaults>
</compile_context>

<pallas_src>
import math
import jax
import jax.numpy as jnp
from jax.experimental import pallas as pl
from jax.experimental.pallas import tpu as pltpu


def _round_up(x, m):
    return ((x + m - 1) // m) * m


def _choose_tm(B, tm_max=1024, target_steps=4, tm_floor=128):
    """Row-tile size.

    Aim for >= target_steps tiles for large B (keeps both v7x TensorCores busy
    with >= 2 steps each on the "parallel" axis), but never tile below
    tm_floor rows (per-step ~600-cycle overhead would dominate) and never
    above tm_max / the whole (sublane-rounded) batch.
    """
    b8 = _round_up(B, 8)
    tm = _round_up(pl.cdiv(B, target_steps), 8)
    tm = max(tm, min(tm_floor, b8))
    tm = min(tm, tm_max, b8)
    return tm


def _critic_kernel(xs_ref, xa_ref, w1s_ref, w1a_ref, b1_ref, w2_ref, b2_ref,
                   w3_ref, b3_ref, q_ref):
    # bf16 operands for the MXU (no-op if already bf16); f32 accumulation,
    # f32 bias/ReLU (v5e-safe).
    xs = xs_ref[...].astype(jnp.bfloat16)
    xa = xa_ref[...].astype(jnp.bfloat16)

    # Fused concat: [xs, xa] @ W1 == xs @ W1[:s] + xa @ W1[s:]
    h1 = (jnp.dot(xs, w1s_ref[...], preferred_element_type=jnp.float32)
          + jnp.dot(xa, w1a_ref[...], preferred_element_type=jnp.float32)
          + b1_ref[...])
    h1 = jnp.maximum(h1, 0.0).astype(jnp.bfloat16)

    h2 = jnp.dot(h1, w2_ref[...], preferred_element_type=jnp.float32) + b2_ref[...]
    h2 = jnp.maximum(h2, 0.0)

    # fc3 (hidden -> 1) on VPU (mul) + XLU (lane reduce); w3 arrives f32 so no
    # per-step cast.  An N=1 MXU matmul would waste a full issue here.
    q = jnp.sum(h2 * w3_ref[...], axis=-1) + b3_ref[0, 0]          # (tm,) f32

    # Lane-dense store: the whole tile of q-values as one lane-major row.
    q_ref[...] = q.reshape(1, 1, q.shape[0]).astype(q_ref.dtype)


def prepare_params(params, n_actions):
    """One-time parameter preprocessing (hoisted out of the per-call path)."""
    w1, b1, w2, b2, w3, b3 = params
    state_dim = int(w1.shape[0]) - int(n_actions)
    hidden = int(w1.shape[1])
    prep = {
        "w1s": jnp.asarray(w1[:state_dim], jnp.bfloat16),        # (state_dim, hidden)
        "w1a": jnp.asarray(w1[state_dim:], jnp.bfloat16),        # (n_actions, hidden)
        "b1": jnp.asarray(b1, jnp.float32).reshape(1, hidden),
        "w2": jnp.asarray(w2, jnp.bfloat16),                     # (hidden, hidden)
        "b2": jnp.asarray(b2, jnp.float32).reshape(1, hidden),
        "w3": jnp.asarray(w3, jnp.float32).reshape(1, hidden),   # f32 (VPU side)
        "b3": jnp.asarray(b3, jnp.float32).reshape(1, 1),        # scalar -> SMEM
    }
    meta = {"state_dim": state_dim, "n_actions": int(n_actions), "hidden": hidden}
    return prep, meta


def ddpg_critic_forward(inputs, actions, prep, meta, hidden_state=None,
                        tm_max=1024):
    """JAX wrapper mirroring DDPGCritic.forward.

    inputs:  (..., state_dim)  -- flattened to (-1, state_dim)
    actions: (..., n_actions)  -- flattened to (-1, n_actions)
    returns: (q of shape (B, 1), hidden_state)
    """
    state_dim = meta["state_dim"]
    n_actions = meta["n_actions"]
    hidden = meta["hidden"]

    xs = inputs.reshape(-1, state_dim)
    xa = actions.reshape(-1, n_actions)
    B = xs.shape[0]

    tm = _choose_tm(B, tm_max=tm_max)
    nb = pl.cdiv(B, tm)          # row tiles; last one may be ragged (masked reads)
    const2 = lambda i: (0, 0)

    q_blocks = pl.pallas_call(
        _critic_kernel,
        out_shape=jax.ShapeDtypeStruct((nb, 1, tm), jnp.float32),
        grid=(nb,),
        in_specs=[
            pl.BlockSpec((tm, state_dim), lambda i: (i, 0)),     # x_state tile
            pl.BlockSpec((tm, n_actions), lambda i: (i, 0)),     # x_action tile
            pl.BlockSpec((state_dim, hidden), const2),           # W1[:s]  (VMEM resident)
            pl.BlockSpec((n_actions, hidden), const2),           # W1[s:]  (VMEM resident)
            pl.BlockSpec((1, hidden), const2),                   # b1
            pl.BlockSpec((hidden, hidden), const2),               # W2
            pl.BlockSpec((1, hidden), const2),                   # b2
            pl.BlockSpec((1, hidden), const2),                   # W3 row (f32)
            pl.BlockSpec((1, 1), const2,
                         memory_space=pltpu.MemorySpace.SMEM),   # b3 scalar
        ],
        out_specs=pl.BlockSpec((1, 1, tm), lambda i: (i, 0, 0)),  # lane-dense q tile
        compiler_params=pltpu.CompilerParams(
            dimension_semantics=("parallel",)),
    )(xs, xa, prep["w1s"], prep["w1a"], prep["b1"], prep["w2"], prep["b2"],
      prep["w3"], prep["b3"])

    # Rows >= B of the flattened output come from the ragged last tile
    # (garbage = f(biases)); slice them off.  Never consume q beyond row B.
    q = q_blocks.reshape(-1)[:B].reshape(B, 1)
    return q, hidden_state


def init_params(key, input_shape, hidden_dim):
    """nn.Linear default init: U(-1/sqrt(fan_in), 1/sqrt(fan_in)).
    Weights stored as (in_features, out_features)."""
    ks = jax.random.split(key, 6)

    def linear(kw, kb, fan_in, fan_out):
        bound = 1.0 / math.sqrt(fan_in)
        w = jax.random.uniform(kw, (fan_in, fan_out), jnp.float32, -bound, bound)
        b = jax.random.uniform(kb, (1, fan_out), jnp.float32, -bound, bound)
        return w, b

    w1, b1 = linear(ks[0], ks[1], input_shape, hidden_dim)
    w2, b2 = linear(ks[2], ks[3], hidden_dim, hidden_dim)
    w3, b3 = linear(ks[4], ks[5], hidden_dim, 1)
    return (w1, b1, w2, b2, w3, b3)


def _reference(inputs, actions, params):
    """Mixed-precision reference matching the kernel's math."""
    w1, b1, w2, b2, w3, b3 = params
    n_actions = actions.shape[-1]
    state_dim = w1.shape[0] - n_actions
    x = jnp.concatenate(
        [inputs.reshape(-1, state_dim), actions.reshape(-1, n_actions)], axis=-1)
    xb = x.astype(jnp.bfloat16)
    h1 = jnp.maximum(
        jnp.dot(xb, w1.astype(jnp.bfloat16), preferred_element_type=jnp.float32)
        + b1, 0.0)
    h2 = jnp.maximum(
        jnp.dot(h1.astype(jnp.bfloat16), w2.astype(jnp.bfloat16),
                preferred_element_type=jnp.float32) + b2, 0.0)
    return jnp.sum(h2 * w3.reshape(1, -1), axis=-1, keepdims=True) + b3.reshape(1, 1)


if __name__ == "__main__":
    # Shapes implied by the module:
    #   scheme['state']['vshape'] = 12, n_actions = 4 -> input_shape = 16
    #   args.rnn_hidden_dim = 32; batch = 2, n_agents = 4 -> flattened B = 8
    state_dim, n_actions, hidden_dim = 12, 4, 32

    key = jax.random.PRNGKey(0)
    k_in, k_act, k_par, k_in2, k_act2 = jax.random.split(key, 5)
    params = init_params(k_par, state_dim + n_actions, hidden_dim)
    prep, meta = prepare_params(params, n_actions)   # one-time, hoisted

    # --- small case (B = 8, single grid step) -------------------------------
    batch, n_agents = 2, 4
    inputs = jax.random.normal(k_in, (batch, n_agents, state_dim), jnp.float32)
    actions = jax.random.normal(k_act, (batch, n_agents, n_actions), jnp.float32)

    q, h = ddpg_critic_forward(inputs, actions, prep, meta, hidden_state=None)
    q = jax.block_until_ready(q)
    r = _reference(inputs, actions, params)
    assert q.shape == (batch * n_agents, 1)
    assert h is None
    assert jnp.allclose(q, r, atol=1e-4, rtol=1e-4)

    # --- larger case (B = 1000: multi-step grid + ragged last tile) ---------
    batch2, n_agents2 = 25, 40
    inputs2 = jax.random.normal(k_in2, (batch2, n_agents2, state_dim), jnp.float32)
    actions2 = jax.random.normal(k_act2, (batch2, n_agents2, n_actions), jnp.float32)

    q2, _ = ddpg_critic_forward(inputs2, actions2, prep, meta, hidden_state=None)
    q2 = jax.block_until_ready(q2)
    r2 = _reference(inputs2, actions2, params)
    assert q2.shape == (batch2 * n_agents2, 1)
    assert jnp.allclose(q2, r2, atol=1e-4, rtol=1e-4)

    print("KERNEL_OK")
</pallas_src>

<mosaic_0001>
module attributes {stable_mosaic.version = 11 : i64} {
  func.func @_critic_kernel(%arg0: i32, %arg1: memref<8x12xf32, #tpu.memory_space<vmem>>, %arg2: memref<8x4xf32, #tpu.memory_space<vmem>>, %arg3: memref<12x32xbf16, #tpu.memory_space<vmem>>, %arg4: memref<4x32xbf16, #tpu.memory_space<vmem>>, %arg5: memref<1x32xf32, #tpu.memory_space<vmem>>, %arg6: memref<32x32xbf16, #tpu.memory_space<vmem>>, %arg7: memref<1x32xf32, #tpu.memory_space<vmem>>, %arg8: memref<1x32xf32, #tpu.memory_space<vmem>>, %arg9: memref<1x1xf32, #tpu.memory_space<smem>>, %arg10: memref<1x1x8xf32, #tpu.memory_space<vmem>>) attributes {dimension_semantics = [#tpu.dimension_semantics<parallel>], iteration_bounds = array<i64: 1>, scalar_prefetch = 0 : i64, scratch_operands = 0 : i64, tpu.core_type = #tpu.core_type<tc>, window_params = [{transform_indices = @transform_0, window_bounds = array<i64: 8, 12>}, {transform_indices = @transform_1, window_bounds = array<i64: 8, 4>}, {pipeline_mode = #tpu.pipeline_mode<synchronous>, transform_indices = @transform_2, window_bounds = array<i64: 12, 32>}, {pipeline_mode = #tpu.pipeline_mode<synchronous>, transform_indices = @transform_3, window_bounds = array<i64: 4, 32>}, {pipeline_mode = #tpu.pipeline_mode<synchronous>, transform_indices = @transform_4, window_bounds = array<i64: 1, 32>}, {pipeline_mode = #tpu.pipeline_mode<synchronous>, transform_indices = @transform_5, window_bounds = array<i64: 32, 32>}, {pipeline_mode = #tpu.pipeline_mode<synchronous>, transform_indices = @transform_6, window_bounds = array<i64: 1, 32>}, {pipeline_mode = #tpu.pipeline_mode<synchronous>, transform_indices = @transform_7, window_bounds = array<i64: 1, 32>}, {transform_indices = @transform_8, window_bounds = array<i64: 1, 1>}, {transform_indices = @transform_9, window_bounds = array<i64: 1, 1, 8>}]} {
    %c0 = arith.constant 0 : index
    %c0_0 = arith.constant 0 : index
    %0 = vector.load %arg1[%c0, %c0_0] : memref<8x12xf32, #tpu.memory_space<vmem>>, vector<8x12xf32>
    %1 = arith.truncf %0 : vector<8x12xf32> to vector<8x12xbf16>
    %c0_1 = arith.constant 0 : index
    %c0_2 = arith.constant 0 : index
    %2 = vector.load %arg2[%c0_1, %c0_2] : memref<8x4xf32, #tpu.memory_space<vmem>>, vector<8x4xf32>
    %3 = arith.truncf %2 : vector<8x4xf32> to vector<8x4xbf16>
    %c0_3 = arith.constant 0 : index
    %c0_4 = arith.constant 0 : index
    %4 = vector.load %arg3[%c0_3, %c0_4] : memref<12x32xbf16, #tpu.memory_space<vmem>>, vector<12x32xbf16>
    %cst = arith.constant dense<0.000000e+00> : vector<8x32xf32>
    %5 = tpu.matmul %1, %4, %cst {dimension_numbers = #tpu.dot_dimension_numbers<[1], [0], [0], [1], [0, 0, 1, 1], [], []>} : vector<8x12xbf16>, vector<12x32xbf16>, vector<8x32xf32> -> vector<8x32xf32>
    %c0_5 = arith.constant 0 : index
    %c0_6 = arith.constant 0 : index
    %6 = vector.load %arg4[%c0_5, %c0_6] : memref<4x32xbf16, #tpu.memory_space<vmem>>, vector<4x32xbf16>
    %cst_7 = arith.constant dense<0.000000e+00> : vector<8x32xf32>
    %7 = tpu.matmul %3, %6, %cst_7 {dimension_numbers = #tpu.dot_dimension_numbers<[1], [0], [0], [1], [0, 0, 1, 1], [], []>} : vector<8x4xbf16>, vector<4x32xbf16>, vector<8x32xf32> -> vector<8x32xf32>
    %8 = arith.addf %5, %7 : vector<8x32xf32>
    %c0_8 = arith.constant 0 : index
    %c0_9 = arith.constant 0 : index
    %9 = vector.load %arg5[%c0_8, %c0_9] : memref<1x32xf32, #tpu.memory_space<vmem>>, vector<1x32xf32>
    %10 = vector.broadcast %9 : vector<1x32xf32> to vector<8x32xf32>
    %11 = arith.addf %8, %10 : vector<8x32xf32>
    %cst_10 = arith.constant 0.000000e+00 : f32
    %12 = vector.broadcast %cst_10 : f32 to vector<8x32xf32>
    %13 = arith.maximumf %11, %12 : vector<8x32xf32>
    %14 = arith.truncf %13 : vector<8x32xf32> to vector<8x32xbf16>
    %c0_11 = arith.constant 0 : index
    %c0_12 = arith.constant 0 : index
    %15 = vector.load %arg6[%c0_11, %c0_12] : memref<32x32xbf16, #tpu.memory_space<vmem>>, vector<32x32xbf16>
    %cst_13 = arith.constant dense<0.000000e+00> : vector<8x32xf32>
    %16 = tpu.matmul %14, %15, %cst_13 {dimension_numbers = #tpu.dot_dimension_numbers<[1], [0], [0], [1], [0, 0, 1, 1], [], []>} : vector<8x32xbf16>, vector<32x32xbf16>, vector<8x32xf32> -> vector<8x32xf32>
    %c0_14 = arith.constant 0 : index
    %c0_15 = arith.constant 0 : index
    %17 = vector.load %arg7[%c0_14, %c0_15] : memref<1x32xf32, #tpu.memory_space<vmem>>, vector<1x32xf32>
    %18 = vector.broadcast %17 : vector<1x32xf32> to vector<8x32xf32>
    %19 = arith.addf %16, %18 : vector<8x32xf32>
    %cst_16 = arith.constant 0.000000e+00 : f32
    %20 = vector.broadcast %cst_16 : f32 to vector<8x32xf32>
    %21 = arith.maximumf %19, %20 : vector<8x32xf32>
    %c0_17 = arith.constant 0 : index
    %c0_18 = arith.constant 0 : index
    %22 = vector.load %arg8[%c0_17, %c0_18] : memref<1x32xf32, #tpu.memory_space<vmem>>, vector<1x32xf32>
    %23 = vector.broadcast %22 : vector<1x32xf32> to vector<8x32xf32>
    %24 = arith.mulf %21, %23 : vector<8x32xf32>
    %cst_19 = arith.constant dense<0.000000e+00> : vector<8xf32>
    %25 = vector.multi_reduction <add>, %24, %cst_19 [1] : vector<8x32xf32> to vector<8xf32>
    %c0_20 = arith.constant 0 : index
    %c0_21 = arith.constant 0 : index
    %26 = memref.load %arg9[%c0_20, %c0_21] : memref<1x1xf32, #tpu.memory_space<smem>>
    %27 = vector.broadcast %26 : f32 to vector<8xf32>
    %28 = arith.addf %25, %27 : vector<8xf32>
    %29 = vector.shape_cast %28 : vector<8xf32> to vector<1x1x8xf32>
    %c0_22 = arith.constant 0 : index
    %c0_23 = arith.constant 0 : index
    %c0_24 = arith.constant 0 : index
    %30 = vector.load %arg10[%c0_22, %c0_23, %c0_24] : memref<1x1x8xf32, #tpu.memory_space<vmem>>, vector<1x1x8xf32>
    tpu.vector_store %arg10[%c0_22, %c0_23, %c0_24], %29 {strides = array<i32>} : memref<1x1x8xf32, #tpu.memory_space<vmem>>, vector<1x1x8xf32>,
    return
  }
  func.func @transform_0(%arg0: i32) -> (i32, i32) {
    %c0_i32 = arith.constant 0 : i32
    %c0_i32_0 = arith.constant 0 : i32
    return %arg0, %c0_i32 : i32, i32
  }
  func.func @transform_1(%arg0: i32) -> (i32, i32) {
    %c0_i32 = arith.constant 0 : i32
    %c0_i32_0 = arith.constant 0 : i32
    return %arg0, %c0_i32 : i32, i32
  }
  func.func @transform_2(%arg0: i32) -> (i32, i32) {
    %c0_i32 = arith.constant 0 : i32
    %c0_i32_0 = arith.constant 0 : i32
    %c0_i32_1 = arith.constant 0 : i32
    return %c0_i32, %c0_i32_0 : i32, i32
  }
  func.func @transform_3(%arg0: i32) -> (i32, i32) {
    %c0_i32 = arith.constant 0 : i32
    %c0_i32_0 = arith.constant 0 : i32
    %c0_i32_1 = arith.constant 0 : i32
    return %c0_i32, %c0_i32_0 : i32, i32
  }
  func.func @transform_4(%arg0: i32) -> (i32, i32) {
    %c0_i32 = arith.constant 0 : i32
    %c0_i32_0 = arith.constant 0 : i32
    %c0_i32_1 = arith.constant 0 : i32
    return %c0_i32, %c0_i32_0 : i32, i32
  }
  func.func @transform_5(%arg0: i32) -> (i32, i32) {
    %c0_i32 = arith.constant 0 : i32
    %c0_i32_0 = arith.constant 0 : i32
    %c0_i32_1 = arith.constant 0 : i32
    return %c0_i32, %c0_i32_0 : i32, i32
  }
  func.func @transform_6(%arg0: i32) -> (i32, i32) {
    %c0_i32 = arith.constant 0 : i32
    %c0_i32_0 = arith.constant 0 : i32
    %c0_i32_1 = arith.constant 0 : i32
    return %c0_i32, %c0_i32_0 : i32, i32
  }
  func.func @transform_7(%arg0: i32) -> (i32, i32) {
    %c0_i32 = arith.constant 0 : i32
    %c0_i32_0 = arith.constant 0 : i32
    %c0_i32_1 = arith.constant 0 : i32
    return %c0_i32, %c0_i32_0 : i32, i32
  }
  func.func @transform_8(%arg0: i32) -> (i32, i32) {
    %c0_i32 = arith.constant 0 : i32
    %c0_i32_0 = arith.constant 0 : i32
    %c0_i32_1 = arith.constant 0 : i32
    return %c0_i32, %c0_i32_0 : i32, i32
  }
  func.func @transform_9(%arg0: i32) -> (i32, i32, i32) {
    %c0_i32 = arith.constant 0 : i32
    %c0_i32_0 = arith.constant 0 : i32
    %c0_i32_1 = arith.constant 0 : i32
    return %arg0, %c0_i32, %c0_i32_0 : i32, i32, i32
  }
}

</mosaic_0001>

<bundles_post_ra>
// kernel: tpu_custom_call.1
= control target key start
LH: loop header
LB: loop body
LE: loop exit
PB: predicated region body
PF: predicated region fallthrough
CT: control target
= control target key end

     0   :  { %15 = vsyncpa [#allocation4], 0  ;;  %s492_s0 = inlined_call_operand.hbm [shape: f32[8,12], index: 0, kind: input, shape index: {}]   ;;  %s493_s1 = inlined_call_operand.vmem [shape: f32[8,4], index: 1, kind: input, shape index: {}]   ;;  %s494_s2 = inlined_call_operand.hbm [shape: bf16[12,32], index: 2, kind: input, shape index: {}]   ;;  %s495_s3 = inlined_call_operand.vmem [shape: bf16[4,32], index: 3, kind: input, shape index: {}]   ;;  %s496_s4 = inlined_call_operand.vmem [shape: f32[1,32], index: 4, kind: input, shape index: {}]   ;;  %s497_s5 = inlined_call_operand.vmem [shape: bf16[32,32], index: 5, kind: input, shape index: {}]   ;;  %s498_s6 = inlined_call_operand.vmem [shape: f32[1,32], index: 6, kind: input, shape index: {}]   ;;  %s499_s7 = inlined_call_operand.vmem [shape: f32[1,32], index: 7, kind: input, shape index: {}]   ;;  %s500_s8 = inlined_call_operand.<no memory space> [shape: f32[1,1], index: 8, kind: input, shape index: {}]   ;;  %s501_s9 = inlined_call_operand.hbm [shape: f32[1,1,8], index: 9, kind: output, shape index: {}]  }
   0x1   :  { %16 = vsyncpa [#allocation7], 0 }
   0x2   :  { %17 = vsyncpa [#allocation5], 0  ;;  %s399_s30 = smov [#allocation3]   ;;  %s400_s11 = smov [#allocation6]  }
   0x3   :  { %s24_s10 = sshll.u32 %s399_s30, 4  ;;  %s35_s12 = sshll.u32 %s400_s11, 4  ;;  %s25_s10 = int_to_ptr.vmem [resolvable:$true] %s24_s10  ;;  %s36_s12 = int_to_ptr.vmem [resolvable:$true] %s35_s12 }
   0x4   :  { %s341_s13 = scalar_lea.vmem %s25_s10, 128  ;;  %p346_p1 = scmp.lt.s32.totalorder %s25_s10, %s25_s10 }
   0x5   :  { %p342_p0 = scmp.ne.s32.totalorder %s25_s10, %s341_s13  ;;  %p347_p2 = scmp.lt.s32.totalorder %s341_s13, %s341_s13 }
   0x7   :  { %p348_p3 = por %p347_p2, %p346_p1 }
   0x9   :  { %p349_p4 = pnand %p348_p3, %p342_p0 }
   0xb   :  { %352 = shalt.err (!%p349_p4)
}
   0xc   :  { %27 = dma.hbm_to_vmem [thread:$0]  %s492_s0, 128, %s25_s10, [#allocation4]  }
   0xd   :  { %s361_s16 = scalar_lea.vmem %s36_s12, 128  ;;  %p366_p6 = scmp.lt.s32.totalorder %s36_s12, %s36_s12 }
   0xe   :  { %p362_p5 = scmp.ne.s32.totalorder %s36_s12, %s361_s16  ;;  %p367_p7 = scmp.lt.s32.totalorder %s361_s16, %s361_s16 }
  0x10   :  { %p368_p8 = por %p367_p7, %p366_p6 }
  0x12   :  { %p369_p9 = pnand %p368_p8, %p362_p5 }
  0x14   :  { %372 = shalt.err (!%p369_p9)
}
  0x15   :  { %s401_s17 = smov 64   ;;  %s402_s18 = smov 4  }
  0x16   :  { %41 = dma.hbm_to_vmem [thread:$0]  %s494_s2, 128, %s36_s12, [#allocation7], %s401_s17, %s401_s17, %s402_s18  }
  0x17   :  { %393 = dma.done.wait [#allocation4], 128  }
  0x18   :  { %394 = vsyncadd [#allocation4], 4294967168 }
  0x19   :  { %395 = dma.done.wait [#allocation7], 128  }
  0x1a   :  { %396 = vsyncadd [#allocation7], 4294967168  ;;  %v403_v0 = vmov 0.0   ;;  %vm404_vm0 = vmmov 0   ;;  %vm72_vm1 = vcmask 1041408   ;;  %vm125_vm2 = vcmask 1045504  }
  0x1b   :  { %303 = vmatprep.subr.bf16.mxu0 %v403_v0  ;;  %309 = vmatprep.subr.bf16.mxu1 %v403_v0  ;;  %v67_v1 = vld [vmem:[%s495_s3] sm:$0x3]  ;;  %v330_v3 = vld [vmem:[#allocation6] sm:$0x3f]   ;;  %vm68_vm3 = vcmask 31744   ;;  %vm121_vm4 = vcmask 97280   ;;  %v262_v34 = vlaneseq  ;;  %v259_v37 = vstv %s500_s8 }
  0x1c   :  { %305 = vmatprep.mubr.msk.bf16.mxu0 %vm404_vm0, %v403_v0  ;;  %311 = vmatprep.mubr.msk.bf16.mxu1 %vm404_vm0, %v403_v0  ;;  %v74_v2 = vsel %vm72_vm1, %v67_v1, 0  ;;  %v63_v4 = vld [vmem:[%s493_s1] sm:$0xff]  ;;  %v127_v7 = vsel %vm125_vm2, %v330_v3, 0  ;;  %v331_v9 = vld [vmem:[%s497_s5 + $0x8] sm:$0xff]   ;;  %vm202_vm5 = vcmask 261120   ;;  %vm269_vm6 = vcmask 57344  }
  0x1d   :  { %v61_v5 = vld [vmem:[#allocation3] sm:$0xff]  ;;  %304 = vmatpush3.bf16.msra.mxu0 %v74_v2  ;;  %v64_v6 = vpack.c.bf16 %v63_v4, %v63_v4  ;;  %310 = vmatpush3.bf16.msra.mxu1 %v127_v7  ;;  %v263_v35 = vand.u32 127, %v262_v34  ;;  %v265_v36 = vshrl.u32 %v262_v34, 7 }
  0x1e   :  { %v62_v8 = vpack.c.bf16 %v61_v5, %v61_v5  ;;  %315 = vmatprep.subr.bf16.mxu0 %v403_v0  ;;  %v332_v10 = vld [vmem:[%s497_s5] sm:$0xff]  }
  0x1f   :  { %v290_v14 = vld [vmem:[%s496_s4] ss:$0 sm:$0xff]  ;;  %v266_v38 = vsub.s32 %v263_v35, %v265_v36 }
  0x20   :  { %306 = vmatmul.mubr.msk.bf16.vlgmr.msra.gmra.mxu0 %vm68_vm3, %v64_v6  ;;  %312 = vmatmul.mubr.msk.bf16.vlgmr.msra.gmra.mxu1 %vm121_vm4, %v62_v8  ;;  %v291_v24 = vld [vmem:[%s498_s6] ss:$0 sm:$0xff]  ;;  %s405_s6 = smov [#allocation8]  }
  0x21   :  { %319 = vmatprep.mubr.msk.bf16.mxu0 %vm404_vm0, %v403_v0  ;;  %316 = vmatpush3.bf16.msra.mxu0 %v331_v9  ;;  %v295_v28 = vld [vmem:[%s499_s7] ss:$0 sm:$0xff]  ;;  %s277_s10 = sshll.u32 %s405_s6, 4  ;;  %s278_s10 = int_to_ptr.vmem [resolvable:$true] %s277_s10 }
  0x22   :  { %317 = vmatprep.subr.bf16.mxu0 %v403_v0  ;;  %s373_s7 = scalar_lea.vmem %s278_s10, 16  ;;  %s377_s11 = scalar_lea.vmem %s278_s10, 32 }
  0x23   :  { %p374_p10 = scmp.ne.s32.totalorder %s278_s10, %s373_s7  ;;  %p378_p11 = scmp.lt.s32.totalorder %s278_s10, %s278_s10 }
  0x24   :  { %p379_p12 = scmp.lt.s32.totalorder %s377_s11, %s373_s7 }
  0x25   :  { %318 = vmatpush3.bf16.msra.mxu0 %v332_v10 }
  0x26   :  { %p380_p13 = por %p379_p12, %p378_p11 }
  0x28   :  { %p381_p0 = pnand %p380_p13, %p374_p10 }
  0xe0   :  { %v110_v11 = vpop.f32.mrf.mxu0  ;;  %v163_v13 = vpop.f32.mrf.mxu1 }
  0xe1   :  { %v164_v15 = vadd.f32 %v163_v13, %v110_v11 }
  0xe2   :  { %v307_v12 = vpop.f32.mrf.mxu0  ;;  %v313_v17 = vpop.f32.mrf.mxu1 }
  0xe3   :  { %v176_v18 = vadd.f32 %v290_v14, %v164_v15 }
  0xe4   :  { %v113_v16 = vpop.f32.mrf.mxu0  ;;  %v166_v20 = vpop.f32.mrf.mxu1 }
  0xe5   :  { %v177_v21 = vmax.f32 %v176_v18, 0.0 }
  0xe6   :  { %v308_v19 = vpop.f32.mrf.mxu0  ;;  %v314_v22 = vpop.f32.mrf.mxu1 }
  0xe7   :  { %v178_v23 = vpack.c.bf16 %v177_v21, %v177_v21 }
  0xe9   :  { %320 = vmatmul.mubr.msk.bf16.vlgmr.msra.gmra.mxu0 %vm202_vm5, %v178_v23 }
 0x1a9   :  { %v240_v25 = vpop.f32.mrf.mxu0 }
 0x1aa   :  { %v241_v26 = vadd.f32 %v291_v24, %v240_v25 }
 0x1ab   :  { %v321_v27 = vpop.f32.mrf.mxu0 }
 0x1ac   :  { %v246_v29 = vmax.f32 %v241_v26, 0.0 }
 0x1ad   :  { %v243_v30 = vpop.f32.mrf.mxu0 }
 0x1ae   :  { %v254_v31 = vmul.f32 %v295_v28, %v246_v29 }
 0x1af   :  { %v322_v32 = vpop.f32.mrf.mxu0 }
 0x1b0   :  { %v255_v33 = vsel %vm202_vm5, %v254_v31, 0.0 }
 0x1b1   :  { %256 = vadd.xlane.f32.xlu0 %v255_v33 }
 0x23a   :  { %v257_v39 = vpop.xlane.xlu0 %256 }
 0x23b   :  { %v260_v40 = vadd.f32 %v259_v37, %v257_v39 }
 0x23d   :  { %v267_v41 = vrot.slane %v260_v40, %v266_v38 }
 0x23f   :  { %270 = vst.msk [vmem:[#allocation8] sm:$0x1] %vm269_vm6, %v267_v41 }
 0x240   :  { %384 = shalt.err (!%p381_p0)
}
 0x241   :  { %280 = dma.vmem_to_hbm [thread:$0]  %s278_s10, 16, %s501_s9, [#allocation5]  }
 0x242   :  { %397 = dma.done.wait [#allocation5], 16  }
 0x243   :  { %398 = vsyncadd [#allocation5], 4294967280 }
 0x244   :  { %284 = vsyncpa [#allocation4], 1 }
 0x245   :  { %285 = vsyncpa [#allocation7], 1 }
 0x246   :  { %286 = vsyncpa [#allocation5], 1 }

</bundles_post_ra>
